<compile_context>
chip_gen: v6e
topology: v6e:2x2x1
jax: 0.10.0
libtpu: 0.0.40
codegen_flags: <defaults>
</compile_context>

<pallas_src>
import functools

import jax
import jax.numpy as jnp
from jax.experimental import pallas as pl
from jax.experimental.pallas import tpu as pltpu


def _round_up(a: int, m: int) -> int:
    return ((a + m - 1) // m) * m


def _sublane_multiple(dtype) -> int:
    # f32 -> 8, bf16 -> 16, int8/fp8 -> 32 (sublane packing of sub-32-bit dtypes).
    return max(8, 32 // jnp.dtype(dtype).itemsize)


def _vmem_capacity_bytes() -> int:
    try:
        cap = getattr(pltpu.get_tpu_info(), "vmem_capacity_bytes", None)
        if cap:
            return int(cap)
    except Exception:
        pass
    return 64 * 1024 * 1024  # conservative (v7x); v5e/v6e have 128 MiB physical.


def _picard_kernel(x_ref, w_ref, b_ref, s_ref, o_ref, *,
                   tail_start: int, tn_out: int, n_col: int):
    # x_ref: (TM, H)  w_ref: (H, TN_w)  b_ref/s_ref: (1, TN_w)  o_ref: (TM, tn_out)
    x = x_ref[...]

    # MXU: only the tail columns of the linear layer ((1 - r) already folded in).
    z = jnp.dot(x, w_ref[...], preferred_element_type=jnp.float32) + b_ref[...]
    z = z[:, :tn_out]                    # no-op unless the weight is lane-padded
    scale = s_ref[...][:, :tn_out]       # 1.0 on passthrough cols, r on blended cols

    if n_col == 1:                       # static: tail fits one column block
        x_t = x[:, tail_start:tail_start + tn_out]
    else:                                # column-tiled tail (large q): aligned ds
        col0 = pl.multiple_of(tail_start + pl.program_id(1) * tn_out, 128)
        x_t = x_ref[:, pl.ds(col0, tn_out)]

    # Single unmasked full-block store: scale * x_tail + z (all in f32, cast once).
    out = scale * x_t.astype(jnp.float32) + z
    o_ref[...] = out.astype(o_ref.dtype)


def picard_step(x: jax.Array, W: jax.Array, b: jax.Array, *, q: int, r: float) -> jax.Array:
    """x: (B, S, H); W: (H, H) = nn.Linear weight (out, in); b: (H,)."""
    B, S, H = x.shape
    assert 1 <= q <= H, "PicardStep kernel requires 1 <= q <= hidden"
    M = B * S
    xf = x.reshape(M, H)
    x_it = jnp.dtype(x.dtype).itemsize
    sub = _sublane_multiple(x.dtype)

    # ---- Tail-column geometry (lane-aligned window containing the last q cols) ----
    if H % 128 == 0:
        tail_start = ((H - q) // 128) * 128       # 128-aligned start of the tail window
        tail = H - tail_start                     # multiple of 128, q <= tail <= q + 127
        tn_out = 256 if (tail % 256 == 0 and tail_start % 256 == 0) else 128
        tn_w = tn_out
        n_col = tail // tn_out
        w_cols = tail
    else:
        # Small / unaligned H: single full-width block (lane constraints force it);
        # the matmul N dim is still padded to a lane multiple for a dense MXU shape.
        tail_start, tail, tn_out, n_col = 0, H, H, 1
        tn_w = _round_up(H, 128)
        w_cols = tn_w

    # ---- Fold (1 - r) into the sliced weight / bias; build the blend vector -------
    w_q = (jnp.float32(1.0 - r) * W[H - q:, :].astype(jnp.float32)).T       # (H, q)
    b_q = jnp.float32(1.0 - r) * b[H - q:].astype(jnp.float32)              # (q,)
    w_t = jnp.pad(w_q, ((0, 0), (tail - q, w_cols - tail))).astype(x.dtype)
    b_t = jnp.pad(b_q, (tail - q, w_cols - tail)).reshape(1, w_cols).astype(jnp.float32)
    col = jnp.arange(w_cols)
    scale = jnp.where((col >= tail - q) & (col < tail),
                      jnp.float32(r), jnp.float32(1.0)).reshape(1, w_cols)
    w_it = jnp.dtype(w_t.dtype).itemsize

    # ---- Generation-aware VMEM budgeting ------------------------------------------
    vmem_cap = _vmem_capacity_bytes()
    budget = min((vmem_cap * 3) // 5, 96 * 1024 * 1024)
    # Constant-index blocks are still double-buffered -> count the weight twice;
    # 4 * tn_w * 4 bytes/row covers the f32 intermediates (z, x_tail, out).
    resident = 2 * H * tn_w * w_it + 2 * 2 * tn_w * 4
    row_bytes = 2 * H * x_it + 2 * tn_out * x_it + 4 * tn_w * 4
    tm_cap = max(sub, ((budget - resident) // max(row_bytes, 1)) // sub * sub)
    # Keep >= ~8 row steps so both v7x TensorCores get work and the pipeline overlaps.
    tm_want = _round_up(max(1, -(-M // 8)), sub)
    TM = max(sub, min(tm_cap, tm_want, 2048))

    rows = -(-M // TM)
    footprint = resident + TM * row_bytes + (1 << 20)
    vmem_limit = int(min((vmem_cap * 3) // 4, max(2 * footprint, 32 * 1024 * 1024)))

    col0_blk = tail_start // tn_out    # first tail column-block index in the output

    cost = pl.CostEstimate(
        flops=2 * M * H * w_cols,
        transcendentals=0,
        bytes_accessed=M * H * x_it + M * n_col * tn_out * x_it + H * w_cols * w_it,
    )

    kernel = functools.partial(_picard_kernel, tail_start=tail_start,
                               tn_out=tn_out, n_col=n_col)

    out = pl.pallas_call(
        kernel,
        out_shape=jax.ShapeDtypeStruct((M, H), x.dtype),
        grid=(rows, n_col),
        in_specs=[
            pl.BlockSpec((TM, H), lambda i, j: (i, 0)),      # x rows (resident over j)
            pl.BlockSpec((H, tn_w), lambda i, j: (0, j)),    # sliced, (1-r)-scaled weight
            pl.BlockSpec((1, tn_w), lambda i, j: (0, j)),    # (1-r)-scaled bias (f32)
            pl.BlockSpec((1, tn_w), lambda i, j: (0, j)),    # per-column blend factor
        ],
        out_specs=pl.BlockSpec((TM, tn_out), lambda i, j: (i, col0_blk + j)),
        input_output_aliases={0: 0},   # output starts as x -> passthrough cols stay put
        compiler_params=pltpu.CompilerParams(
            dimension_semantics=("parallel", "arbitrary"),
            vmem_limit_bytes=vmem_limit),
        cost_estimate=cost,
    )(xf, w_t, b_t, scale)

    return out.reshape(B, S, H)


def picard_step_ref(x, W, b, *, q: int, r: float):
    """Pure-JAX reference mirroring the PyTorch forward."""
    z = jnp.einsum("...h,kh->...k", x, W, precision=jax.lax.Precision.HIGHEST) + b
    y = r * x[..., -q:] + (1.0 - r) * z[..., -q:]
    return jnp.concatenate([x[..., :-q], y], axis=-1)


if __name__ == "__main__":
    def _check(B, S, H, q, r, case):
        key = jax.random.fold_in(jax.random.PRNGKey(0), case)
        kx, kw, kb = jax.random.split(key, 3)
        x = jax.random.normal(kx, (B, S, H), dtype=jnp.float32)
        # nn.Linear(H, H): weight (H_out, H_in), bias (H_out,).
        W = jax.random.normal(kw, (H, H), dtype=jnp.float32) * 0.05
        b = jax.random.normal(kb, (H,), dtype=jnp.float32) * 0.05

        ref = jax.block_until_ready(picard_step_ref(x, W, b, q=q, r=r))
        out = jax.block_until_ready(picard_step(x, W, b, q=q, r=r))
        assert out.shape == (B, S, H)
        assert jnp.allclose(out, ref, atol=1e-4, rtol=1e-4), \
            f"mismatch vs reference (B={B}, S={S}, H={H}, q={q}, r={r})"

    # 1) Spec-sized case (hidden=32): small/unaligned H -> full-width single block.
    _check(2, 8, 32, 4, 0.5, case=0)
    # 2) 128-aligned H, ragged rows: tail-only writes, passthrough cols via the alias.
    _check(2, 9, 256, 8, 0.5, case=1)
    # 3) Large q: multi-column tail (second grid axis + dynamic lane-sliced x tail).
    _check(2, 8, 640, 200, 0.25, case=2)

    print("KERNEL_OK")
</pallas_src>

<mosaic_0001>
module attributes {stable_mosaic.version = 11 : i64} {
  func.func @_picard_kernel(%arg0: i32, %arg1: i32, %arg2: memref<8x32xf32, #tpu.memory_space<vmem>>, %arg3: memref<32x128xf32, #tpu.memory_space<vmem>>, %arg4: memref<1x128xf32, #tpu.memory_space<vmem>>, %arg5: memref<1x128xf32, #tpu.memory_space<vmem>>, %arg6: memref<8x32xf32, #tpu.memory_space<vmem>>) attributes {dimension_semantics = [#tpu.dimension_semantics<parallel>, #tpu.dimension_semantics<arbitrary>], iteration_bounds = array<i64: 2, 1>, scalar_prefetch = 0 : i64, scratch_operands = 0 : i64, tpu.core_type = #tpu.core_type<tc>, window_params = [{transform_indices = @transform_0, window_bounds = array<i64: 8, 32>}, {transform_indices = @transform_1, window_bounds = array<i64: 32, 128>}, {transform_indices = @transform_2, window_bounds = array<i64: 1, 128>}, {transform_indices = @transform_3, window_bounds = array<i64: 1, 128>}, {transform_indices = @transform_4, window_bounds = array<i64: 8, 32>}]} {
    %c0 = arith.constant 0 : index
    %c0_0 = arith.constant 0 : index
    %0 = vector.load %arg2[%c0, %c0_0] : memref<8x32xf32, #tpu.memory_space<vmem>>, vector<8x32xf32>
    %c0_1 = arith.constant 0 : index
    %c0_2 = arith.constant 0 : index
    %1 = vector.load %arg3[%c0_1, %c0_2] : memref<32x128xf32, #tpu.memory_space<vmem>>, vector<32x128xf32>
    %cst = arith.constant dense<0.000000e+00> : vector<8x128xf32>
    %2 = tpu.matmul %0, %1, %cst {dimension_numbers = #tpu.dot_dimension_numbers<[1], [0], [0], [1], [0, 0, 1, 1], [], []>} : vector<8x32xf32>, vector<32x128xf32>, vector<8x128xf32> -> vector<8x128xf32>
    %c0_3 = arith.constant 0 : index
    %c0_4 = arith.constant 0 : index
    %3 = vector.load %arg4[%c0_3, %c0_4] : memref<1x128xf32, #tpu.memory_space<vmem>>, vector<1x128xf32>
    %4 = vector.broadcast %3 : vector<1x128xf32> to vector<8x128xf32>
    %5 = arith.addf %2, %4 : vector<8x128xf32>
    %6 = vector.extract_strided_slice %5 {offsets = [0, 0], sizes = [8, 32], strides = [1, 1]} : vector<8x128xf32> to vector<8x32xf32>
    %c0_5 = arith.constant 0 : index
    %c0_6 = arith.constant 0 : index
    %7 = vector.load %arg5[%c0_5, %c0_6] : memref<1x128xf32, #tpu.memory_space<vmem>>, vector<1x128xf32>
    %8 = vector.extract_strided_slice %7 {offsets = [0, 0], sizes = [1, 32], strides = [1, 1]} : vector<1x128xf32> to vector<1x32xf32>
    %9 = vector.broadcast %8 : vector<1x32xf32> to vector<8x32xf32>
    %10 = arith.mulf %9, %0 : vector<8x32xf32>
    %11 = arith.addf %10, %6 : vector<8x32xf32>
    %c0_7 = arith.constant 0 : index
    %c0_8 = arith.constant 0 : index
    %12 = vector.load %arg6[%c0_7, %c0_8] : memref<8x32xf32, #tpu.memory_space<vmem>>, vector<8x32xf32>
    tpu.vector_store %arg6[%c0_7, %c0_8], %11 {strides = array<i32>} : memref<8x32xf32, #tpu.memory_space<vmem>>, vector<8x32xf32>,
    return
  }
  func.func @transform_0(%arg0: i32, %arg1: i32) -> (i32, i32) {
    %c0_i32 = arith.constant 0 : i32
    %c0_i32_0 = arith.constant 0 : i32
    return %arg0, %c0_i32 : i32, i32
  }
  func.func @transform_1(%arg0: i32, %arg1: i32) -> (i32, i32) {
    %c0_i32 = arith.constant 0 : i32
    %c0_i32_0 = arith.constant 0 : i32
    return %c0_i32, %arg1 : i32, i32
  }
  func.func @transform_2(%arg0: i32, %arg1: i32) -> (i32, i32) {
    %c0_i32 = arith.constant 0 : i32
    %c0_i32_0 = arith.constant 0 : i32
    return %c0_i32, %arg1 : i32, i32
  }
  func.func @transform_3(%arg0: i32, %arg1: i32) -> (i32, i32) {
    %c0_i32 = arith.constant 0 : i32
    %c0_i32_0 = arith.constant 0 : i32
    return %c0_i32, %arg1 : i32, i32
  }
  func.func @transform_4(%arg0: i32, %arg1: i32) -> (i32, i32) {
    %c0_i32 = arith.constant 0 : i32
    %0 = arith.addi %c0_i32, %arg1 : i32
    %c0_i32_0 = arith.constant 0 : i32
    return %arg0, %0 : i32, i32
  }
}

</mosaic_0001>

<bundles_post_ra>
// kernel: tpu_custom_call.1
= control target key start
LH: loop header
LB: loop body
LE: loop exit
PB: predicated region body
PF: predicated region fallthrough
CT: control target
= control target key end

     0   :  { %9 = vsyncpa [#allocation3], 0  ;;  %s893_s0 = inlined_call_operand.hbm [shape: f32[16,32], index: 0, kind: input, shape index: {}, may-alias: {0,4}]   ;;  %s894_s1 = inlined_call_operand.vmem [shape: f32[32,128], index: 1, kind: input, shape index: {}]   ;;  %s895_s2 = inlined_call_operand.vmem [shape: f32[1,128], index: 2, kind: input, shape index: {}]   ;;  %s896_s3 = inlined_call_operand.vmem [shape: f32[1,128], index: 3, kind: input, shape index: {}]   ;;  %s897_s4 = inlined_call_operand.hbm [shape: f32[16,32], index: 4, kind: output, shape index: {}, may-alias: {0,4}]  }
   0x1   :  { %11 = vsyncpa [#allocation3 + $0x1], 0 }
   0x2   :  { %12 = vsyncpa [#allocation4], 0 }
   0x3   :  { %14 = vsyncpa [#allocation4 + $0x1], 0  ;;  %s739_s15 = smov 0   ;;  %s741_s16 = smov 0  }
   0x4   :  { %s743_s17 = smov 0   ;;  %s745_s18 = smov 0  }
   0x5   :  { %s747_s19 = smov 0   ;;  %s749_s20 = smov 0  }
   0x6 LB: > { %s501_s21 = sadd.s32 4294967295, %s708_s20   ;;  %s502_s22 = sadd.s32 4294967294, %s708_s20   ;;  %s708_s20 = sphi %s749_s20, %s20_s20   ;;  %s704_s19 = sphi %s747_s19, %s909_s19   ;;  %s700_s18 = sphi %s745_s18, %s908_s18   ;;  %s696_s17 = sphi %s743_s17, %s907_s17   ;;  %s692_s16 = sphi %s741_s16, %s906_s16   ;;  %s688_s15 = sphi %s739_s15, %s905_s15  }
   0x7   : > { %s32_s23 = sadd.s32 1, %s704_s19  ;;  %s39_s24 = sadd.s32 1, %s696_s17 }
   0x8   : > { %p34_p0 = scmp.ge.s32.totalorder %s32_s23, 2  ;;  %p46_p1 = scmp.ne.s32.totalorder %s696_s17, %s692_s16 }
   0x9   : > { %p47_p2 = scmp.eq.s32.totalorder %s708_s20, 0  ;;  %p52_p3 = scmp.ne.s32.totalorder %s692_s16, %s688_s15 }
   0xa   : > { %s911_s23 = smov (%p34_p0, %s32_s23), 0  ;;  %p53_p5 = scmp.eq.s32.totalorder %s501_s21, 0 }
   0xb   : > { %p780_p4 = por %p47_p2, %p46_p1  ;;  %s36_s26 = ssub.s32 %s704_s19, %s911_s23 }
   0xc   : > { %p156_p6 = scmp.eq.s32.totalorder %s501_s21, 1  ;;  %p37_p7 = scmp.eq.s32.totalorder %s36_s26, 0 }
   0xd   : > { %p786_p8 = por %p53_p5, %p52_p3  ;;  %p162_p10 = scmp.eq.s32.totalorder %s502_s22, 1 }
   0xe   : > { %p790_p9 = por %p156_p6, %p46_p1  ;;  %p548_p13 = scmp.lt.s32.totalorder %s708_s20, 2 }
   0xf   : > { %s795_s29 = scalar_select %p37_p7, %s696_s17, %s39_s24  }
  0x10   : > { %p797_p11 = por %p162_p10, %p52_p3  ;;  %s201_s5 = sand.u32 1, %s696_s17  }
  0x11   : > { %s508_s6 = sshll.u32 %s201_s5, 3  ;;  %s509_s7 = sshll.u32 %s704_s19, 7 }
  0x12   : > { %s901_s30 = scalar_select %p797_p11, 1, 0 }
  0x13   : > { %s210_s10 = scalar_lea.hbm %s893_s0, %s509_s7  ;;  %s205_s11 = scalar_lea.vmem [#allocation2], %s508_s6 }
  0x14   : > { %s212_s12 = sshll.u32 %s205_s11, 4  ;;  %p810_p0 = pnand %p548_p13, %p780_p4  ;;  %s213_s12 = int_to_ptr.vmem [resolvable:$true] %s212_s12 }
  0x15   : > { %p510_p1 = scmp.ge.s32.totalorder %s708_s20, 1  ;;  %p217_p2 = scmp.lt.s32.totalorder %s708_s20, 3 }
  0x16   : > { %s202_s14 = scalar_lea.sflag [#allocation3], %s201_s5  ;;  %p602_p3 = pneg %p810_p0 }
  0x17   : > { %s613_s21 = scalar_lea.vmem %s213_s12, 128  ;;  %s710_s22 = smov [#allocation2]  }
  0x18   : > { %p614_p5 = scmp.ne.s32.totalorder %s213_s12, %s613_s21  ;;  %s618_s24 = sshll.u32 %s710_s22, 4  ;;  %s619_s24 = int_to_ptr.vmem [resolvable:$false] %s618_s24 }
  0x19   : > { %s620_s26 = scalar_lea.vmem %s619_s24, 256  ;;  %p621_p10 = scmp.lt.s32.totalorder %s213_s12, %s619_s24 }
  0x1a   : > { %p616_p6 = pnand %p614_p5, %p602_p3  ;;  %p622_p12 = scmp.lt.s32.totalorder %s620_s26, %s613_s21 }
  0x1c   : > { %p617_p7 = pneg %p616_p6  ;;  %p623_p4 = por %p622_p12, %p621_p10 }
  0x1e   : > { %p624_p13 = pnand %p623_p4, %p617_p7 }
  0x20   : > { %627 = shalt.err (!%p624_p13)
}
  0x21   : > { %543 = dma.hbm_to_vmem [thread:$0]  (!%p810_p0), %s210_s10, 128, %s213_s12, %s202_s14  }
  0x22   : > { %p218_p11 = pnand %p510_p1, %p217_p2 }
  0x23   : > { %s825_s25 = sand.u32 (!%p218_p11), 1, %s692_s16  }
  0x24   : > { %221 = sbr.rel (%p218_p11) target bundleno = 261 (0x105), region = 36  ;;  %s511_s5 = sshll.u32 (!%p218_p11), %s825_s25, 3 }
  0x25   : > { %s224_s6 = scalar_lea.sflag (!%p218_p11), [#allocation3], %s825_s25  ;;  %s227_s7 = scalar_lea.vmem (!%p218_p11), [#allocation2], %s511_s5 }
  0x29   : > { %679 = dma.done.wait (%p786_p8), %s224_s6, 128  }
  0x2a   : > { %681 = vsyncadd (%p786_p8), %s224_s6, 4294967168  ;;  %v711_v0 = vmov 0.0   ;;  %vm712_vm0 = vmmov 0   ;;  %v276_v1 = vld [vmem:[%s894_s1 + $0x18] sm:$0xff]  ;;  %v275_v2 = vld [vmem:[%s894_s1 + $0x10] sm:$0xff]  ;;  %vm284_vm1 = vcmask 261120  }
  0x2b   : > { %525 = vmatprep.subr.mxu0 %v711_v0  ;;  %533 = vmatprep.mubr.msk.f32.mxu0 %vm712_vm0, %v711_v0  ;;  %v274_v3 = vld [vmem:[%s894_s1 + $0x8] sm:$0xff]  ;;  %v273_v4 = vld [vmem:[%s894_s1] sm:$0xff]  ;;  %s517_s6 = sshll.u32 %s700_s18, 7  ;;  %s261_s8 = scalar_lea.vmem [#allocation5], %s511_s5 }
  0x2c   : > { %526 = vmatpush3.msra.mxu0 %v276_v1  ;;  %v272_v5 = vld [vmem:[%s227_s7] sm:$0xff]  ;;  %s383_s7 = sshll.u32 %s261_s8, 4  ;;  %s381_s11 = scalar_lea.hbm %s897_s4, %s517_s6  ;;  %s384_s7 = int_to_ptr.vmem [resolvable:$true] %s383_s7 }
  0x2d   : > { %527 = vmatprep.subr.mxu0 %v711_v0  ;;  %v515_v6 = vld [vmem:[%s896_s3] ss:$0 sm:$0xff]  ;;  %s369_s12 = scalar_lea.sflag [#allocation4], %s825_s25  ;;  %s628_s13 = scalar_lea.vmem %s384_s7, 128 }
  0x2e   : > { %528 = vmatpush3.msra.mxu0 %v275_v2  ;;  %v513_v7 = vld [vmem:[%s895_s2] ss:$0 sm:$0xff]  ;;  %v365_v8 = vmul.f32 %v515_v6, %v272_v5  ;;  %p629_p8 = scmp.ne.s32.totalorder %s384_s7, %s628_s13  ;;  %s713_s27 = smov [#allocation5]  }
  0x2f   : > { %529 = vmatprep.subr.mxu0 %v711_v0  ;;  %s632_s18 = sshll.u32 %s713_s27, 4  ;;  %s633_s18 = int_to_ptr.vmem [resolvable:$false] %s632_s18 }
  0x30   : > { %530 = vmatpush3.msra.mxu0 %v274_v3  ;;  %p630_p11 = pnand %p629_p8, %p790_p9  ;;  %s634_s5 = scalar_lea.vmem %s633_s18, 256 }
  0x31   : > { %531 = vmatprep.subr.mxu0 %v711_v0  ;;  %p635_p0 = scmp.lt.s32.totalorder %s384_s7, %s633_s18  ;;  %p636_p1 = scmp.lt.s32.totalorder %s634_s5, %s628_s13 }
  0x32   : > { %532 = vmatpush3.msra.mxu0 %v273_v4  ;;  %p631_p12 = pneg %p630_p11 }
  0x33   : > { %534 = vmatmul.mubr.msk.f32.vlgmr.msra.gmra.mxu0 %vm284_vm1, %v272_v5  ;;  %p637_p2 = por %p636_p1, %p635_p0 }
  0x35   : > { %p638_p3 = pnand %p637_p2, %p631_p12 }
  0xf3   : > { %v354_v9 = vpop.f32.mrf.mxu0 }
  0xf4   : > { %v355_v10 = vadd.f32 %v513_v7, %v354_v9 }
  0xf5   : > { %v535_v11 = vpop.f32.mrf.mxu0 }
  0xf6   : > { %v366_v12 = vadd.f32 %v365_v8, %v355_v10 }
  0xf8   : > { %367 = vst.msk [vmem:[%s261_s8] sm:$0xff] %vm284_vm1, %v366_v12 }
  0xf9   : > { %641 = shalt.err (!%p638_p3)
}
  0xfa   : > { %s642_s14 = scalar_lea.hbm %s381_s11, 128  ;;  %s646_s22 = scalar_lea.hbm %s897_s4, 256 }
  0xfb   : > { %p643_p5 = scmp.ne.s32.totalorder %s381_s11, %s642_s14  ;;  %p647_p10 = scmp.lt.s32.totalorder %s381_s11, %s897_s4 }
  0xfc   : > { %p648_p4 = scmp.lt.s32.totalorder %s646_s22, %s642_s14 }
  0xfd   : > { %p644_p6 = pnand %p643_p5, %p790_p9 }
  0xfe   : > { %p649_p13 = por %p648_p4, %p647_p10 }
  0xff   : > { %p645_p7 = pneg %p644_p6 }
 0x101   : > { %p650_p8 = pnand %p649_p13, %p645_p7 }
 0x103   : > { %653 = shalt.err (!%p650_p8)
}
 0x104   : > { %538 = dma.vmem_to_hbm [thread:$0]  (%p790_p9), %s384_s7, 128, %s381_s11, %s369_s12  }
 0x105 PF: > { %s395_s6 = sand.u32 1, %s688_s15   ;;  %p903_p11 = scmp.ne.s32.totalorder %s901_s30, 0 }
 0x106   : > { %p904_p12 = scmp.ge.s32.totalorder %s708_s20, 2  ;;  %s396_s8 = scalar_lea.sflag [#allocation4], %s395_s6 }
 0x108   : > { %p545_p0 = pnand %p904_p12, %p903_p11 }
 0x10a   : > { %p546_p1 = pneg %p545_p0 }
 0x10c   : > { %683 = dma.done.wait (%p546_p1), %s396_s8, 128  }
 0x10d   : > { %685 = vsyncadd (%p546_p1), %s396_s8, 4294967168  ;;  %s20_s20 = sadd.s32 1, %s708_s20   ;;  %s905_s15 = smov %s692_s16 }
 0x10e   : > { %p17_p2 = scmp.ge.s32.totalorder %s20_s20, 4   ;;  %s906_s16 = smov %s696_s17 }
 0x10f   : > { %s907_s17 = smov %s795_s29  ;;  %s908_s18 = smov %s704_s19 }
 0x110   : > { %s909_s19 = smov %s911_s23  ;;  %19 = sbr.rel (!%p17_p2) target bundleno = 6 (0x6), region = 90 }
 0x115   :  { %401 = vsyncpa [#allocation3], 1 }
 0x116   :  { %403 = vsyncpa [#allocation3 + $0x1], 1 }
 0x117   :  { %404 = vsyncpa [#allocation4], 1 }
 0x118   :  { %406 = vsyncpa [#allocation4 + $0x1], 1 }

</bundles_post_ra>
